<compile_context>
chip_gen: v6e
topology: v6e:2x2x1
jax: 0.10.0
libtpu: 0.0.40
codegen_flags: <defaults>
</compile_context>

<pallas_src>
import jax
import jax.numpy as jnp
from jax.experimental import pallas as pl
from jax.experimental.pallas import tpu as pltpu


def _interp_matrix(in_size: int) -> jnp.ndarray:
    """Bilinear x2 upsample matrix (align_corners=False), shape (2*in, in).

    Matches PyTorch nn.Upsample(scale_factor=2, mode='bilinear',
    align_corners=False): src = max((i + 0.5)/2 - 0.5, 0); linear blend of
    floor(src) and min(floor(src)+1, in-1).
    """
    out_size = 2 * in_size
    i = jnp.arange(out_size, dtype=jnp.float32)
    src = jnp.maximum((i + 0.5) / 2.0 - 0.5, 0.0)
    i0 = jnp.minimum(jnp.floor(src).astype(jnp.int32), in_size - 1)
    i1 = jnp.minimum(i0 + 1, in_size - 1)
    lam = src - i0.astype(jnp.float32)
    U = (jax.nn.one_hot(i0, in_size, dtype=jnp.float32) * (1.0 - lam)[:, None]
         + jax.nn.one_hot(i1, in_size, dtype=jnp.float32) * lam[:, None])
    return U  # (2*in_size, in_size)


def _upsample_kernel(x_ref, w_ref, ut_ref, o_ref):
    # x_ref : (1, Cin, H*W)     one batch image, lane axis = H*W
    # w_ref : (Cout, Cin)       1x1-conv weight (resident across batch steps)
    # ut_ref: (H*W, 4*H*W)      bf16 Kronecker upsample operator (resident)
    # o_ref : (1, Cout, 4*H*W)  lane-dense flattened output
    # 1x1 conv first (fewer channels downstream), f32 accumulation.
    y = jnp.dot(w_ref[...], x_ref[0], preferred_element_type=jnp.float32)
    # Spatial upsample: one lane-dense bf16 MXU matmul, K = H*W = 256,
    # N = 4*H*W = 1024 (no masked vst.msk stores, no middle-axis relayouts).
    out = jnp.dot(y.astype(ut_ref.dtype), ut_ref[...],
                  preferred_element_type=jnp.float32)
    o_ref[0] = out.astype(o_ref.dtype)


def upsample_forward(x, conv_w):
    """x: (N, Cin, H, W), conv_w: (Cout, Cin).  Returns (N, Cout, 2H, 2W)."""
    N, Cin, H, W = x.shape
    Cout = conv_w.shape[0]
    H2, W2 = 2 * H, 2 * W
    HW, HW4 = H * W, H2 * W2

    # Precompute the separable operators and their Kronecker product in plain
    # JAX (tiny at this size).  bf16 is bit-exact for these weights
    # (products of {0, 0.25, 0.75, 1}).
    uh = _interp_matrix(H)                               # (2H, H)
    uw = _interp_matrix(W)                               # (2W, W)
    ut = jnp.kron(uh, uw).T.astype(jnp.bfloat16)         # (HW, 4HW)

    x_flat = x.reshape(N, Cin, HW)
    w = conv_w.astype(x.dtype)                           # (Cout, Cin)

    itemsize = jnp.dtype(x.dtype).itemsize
    flops = 2 * N * Cout * Cin * HW + 2 * N * Cout * HW * HW4
    bytes_accessed = (x_flat.size * itemsize
                      + w.size * itemsize
                      + ut.size * jnp.dtype(ut.dtype).itemsize
                      + N * Cout * HW4 * itemsize)

    # Rough scoped-VMEM footprint (the pipeline double-buffers each operand
    # even when its block index is constant); used to set an explicit guard.
    vmem_bytes = 2 * ((Cin * HW) * itemsize
                      + w.size * itemsize
                      + ut.size * jnp.dtype(ut.dtype).itemsize
                      + Cout * HW4 * itemsize)

    out_flat = pl.pallas_call(
        _upsample_kernel,
        out_shape=jax.ShapeDtypeStruct((N, Cout, HW4), x.dtype),
        grid_spec=pltpu.PrefetchScalarGridSpec(
            num_scalar_prefetch=0,
            grid=(N,),   # batch axis; "parallel" -> shards across v7x's 2 TCs
            in_specs=[
                pl.BlockSpec((1, Cin, HW), lambda n: (n, 0, 0)),
                pl.BlockSpec((Cout, Cin), lambda n: (0, 0)),
                pl.BlockSpec((HW, HW4), lambda n: (0, 0)),
            ],
            out_specs=pl.BlockSpec((1, Cout, HW4), lambda n: (n, 0, 0)),
        ),
        compiler_params=pltpu.CompilerParams(
            dimension_semantics=("parallel",),
            vmem_limit_bytes=int(max(16 << 20, 2 * vmem_bytes))),
        cost_estimate=pl.CostEstimate(flops=int(flops), transcendentals=0,
                                      bytes_accessed=int(bytes_accessed)),
    )(x_flat, w, ut)

    return out_flat.reshape(N, Cout, H2, W2)


if __name__ == "__main__":
    # Module config: UpSample(in_channels=4, s_factor=4)
    in_channels, s_factor = 4, 4
    Cin = in_channels + s_factor          # conv input channels (8)
    Cout = in_channels                    # conv output channels (4)
    N, H, W = 2, 16, 16

    key = jax.random.PRNGKey(0)
    kx, kw = jax.random.split(key)
    x = jax.random.normal(kx, (N, Cin, H, W), dtype=jnp.float32)
    # Deterministic 1x1 conv weight init (kaiming-uniform-ish bound like PyTorch).
    bound = 1.0 / (Cin ** 0.5)
    conv_w = jax.random.uniform(kw, (Cout, Cin), dtype=jnp.float32,
                                minval=-bound, maxval=bound)

    out = upsample_forward(x, conv_w)
    out = jax.block_until_ready(out)

    # Reference: separable bilinear x2 upsample (same align_corners=False math
    # as PyTorch) followed by the 1x1 channel matmul, all in f32.
    # TODO(synk): cross-check _interp_matrix once against torch.nn.Upsample offline.
    uh = _interp_matrix(H)
    uw = _interp_matrix(W)
    x_up = jnp.einsum('Hh,nchw,Ww->ncHW', uh, x, uw)
    ref = jnp.einsum('oc,ncHW->noHW', conv_w, x_up)
    assert out.shape == (N, Cout, 2 * H, 2 * W)
    # bf16-class tolerance: the conv result y is rounded to bf16 before the
    # spatial matmul (the upsample operator itself is bf16-exact).
    assert jnp.allclose(out, ref, atol=2e-2, rtol=2e-2)

    print("KERNEL_OK")
</pallas_src>

<mosaic_0001>
module attributes {stable_mosaic.version = 11 : i64} {
  func.func @_upsample_kernel(%arg0: i32, %arg1: memref<1x8x256xf32, #tpu.memory_space<vmem>>, %arg2: memref<4x8xf32, #tpu.memory_space<vmem>>, %arg3: memref<256x1024xbf16, #tpu.memory_space<vmem>>, %arg4: memref<1x4x1024xf32, #tpu.memory_space<vmem>>) attributes {dimension_semantics = [#tpu.dimension_semantics<parallel>], iteration_bounds = array<i64: 2>, scalar_prefetch = 0 : i64, scratch_operands = 0 : i64, tpu.core_type = #tpu.core_type<tc>, window_params = [{transform_indices = @transform_0, window_bounds = array<i64: 1, 8, 256>}, {pipeline_mode = #tpu.pipeline_mode<synchronous>, transform_indices = @transform_1, window_bounds = array<i64: 4, 8>}, {pipeline_mode = #tpu.pipeline_mode<synchronous>, transform_indices = @transform_2, window_bounds = array<i64: 256, 1024>}, {transform_indices = @transform_3, window_bounds = array<i64: 1, 4, 1024>}]} {
    %c0 = arith.constant 0 : index
    %c0_0 = arith.constant 0 : index
    %0 = vector.load %arg2[%c0, %c0_0] : memref<4x8xf32, #tpu.memory_space<vmem>>, vector<4x8xf32>
    %c0_1 = arith.constant 0 : index
    %c0_2 = arith.constant 0 : index
    %c0_3 = arith.constant 0 : index
    %1 = vector.load %arg1[%c0_1, %c0_2, %c0_3] : memref<1x8x256xf32, #tpu.memory_space<vmem>>, vector<1x8x256xf32>
    %2 = vector.shape_cast %1 : vector<1x8x256xf32> to vector<8x256xf32>
    %cst = arith.constant dense<0.000000e+00> : vector<4x256xf32>
    %3 = tpu.matmul %0, %2, %cst {dimension_numbers = #tpu.dot_dimension_numbers<[1], [0], [0], [1], [0, 0, 1, 1], [], []>} : vector<4x8xf32>, vector<8x256xf32>, vector<4x256xf32> -> vector<4x256xf32>
    %4 = arith.truncf %3 : vector<4x256xf32> to vector<4x256xbf16>
    %c0_4 = arith.constant 0 : index
    %c0_5 = arith.constant 0 : index
    %5 = vector.load %arg3[%c0_4, %c0_5] : memref<256x1024xbf16, #tpu.memory_space<vmem>>, vector<256x1024xbf16>
    %cst_6 = arith.constant dense<0.000000e+00> : vector<4x1024xf32>
    %6 = tpu.matmul %4, %5, %cst_6 {dimension_numbers = #tpu.dot_dimension_numbers<[1], [0], [0], [1], [0, 0, 1, 1], [], []>} : vector<4x256xbf16>, vector<256x1024xbf16>, vector<4x1024xf32> -> vector<4x1024xf32>
    %c0_7 = arith.constant 0 : index
    %c0_8 = arith.constant 0 : index
    %c0_9 = arith.constant 0 : index
    %7 = vector.load %arg4[%c0_7, %c0_8, %c0_9] : memref<1x4x1024xf32, #tpu.memory_space<vmem>>, vector<1x4x1024xf32>
    %8 = vector.shape_cast %7 : vector<1x4x1024xf32> to vector<4x1024xf32>
    %9 = vector.shape_cast %6 : vector<4x1024xf32> to vector<1x4x1024xf32>
    tpu.vector_store %arg4[%c0_7, %c0_8, %c0_9], %9 {strides = array<i32>} : memref<1x4x1024xf32, #tpu.memory_space<vmem>>, vector<1x4x1024xf32>,
    return
  }
  func.func @transform_0(%arg0: i32) -> (i32, i32, i32) {
    %c0_i32 = arith.constant 0 : i32
    %c0_i32_0 = arith.constant 0 : i32
    %c0_i32_1 = arith.constant 0 : i32
    return %arg0, %c0_i32, %c0_i32_0 : i32, i32, i32
  }
  func.func @transform_1(%arg0: i32) -> (i32, i32) {
    %c0_i32 = arith.constant 0 : i32
    %c0_i32_0 = arith.constant 0 : i32
    %c0_i32_1 = arith.constant 0 : i32
    return %c0_i32, %c0_i32_0 : i32, i32
  }
  func.func @transform_2(%arg0: i32) -> (i32, i32) {
    %c0_i32 = arith.constant 0 : i32
    %c0_i32_0 = arith.constant 0 : i32
    %c0_i32_1 = arith.constant 0 : i32
    return %c0_i32, %c0_i32_0 : i32, i32
  }
  func.func @transform_3(%arg0: i32) -> (i32, i32, i32) {
    %c0_i32 = arith.constant 0 : i32
    %c0_i32_0 = arith.constant 0 : i32
    %c0_i32_1 = arith.constant 0 : i32
    return %arg0, %c0_i32, %c0_i32_0 : i32, i32, i32
  }
}

</mosaic_0001>

<bundles_post_ra>
// kernel: tpu_custom_call.1
= control target key start
LH: loop header
LB: loop body
LE: loop exit
PB: predicated region body
PF: predicated region fallthrough
CT: control target
= control target key end

     0   :  { %8 = vsyncpa [#allocation3], 0  ;;  %s1930_s0 = inlined_call_operand.hbm [shape: f32[2,8,256], index: 0, kind: input, shape index: {}]   ;;  %s1931_s1 = inlined_call_operand.hbm [shape: f32[4,8], index: 1, kind: input, shape index: {}]   ;;  %s1932_s2 = inlined_call_operand.hbm [shape: bf16[256,1024], index: 2, kind: input, shape index: {}]   ;;  %s1933_s3 = inlined_call_operand.hbm [shape: f32[2,4,1024], index: 3, kind: output, shape index: {}]  }
   0x1   :  { %10 = vsyncpa [#allocation3 + $0x1], 0 }
   0x2   :  { %11 = vsyncpa [#allocation6], 0 }
   0x3   :  { %12 = vsyncpa [#allocation4], 0 }
   0x4   :  { %14 = vsyncpa [#allocation4 + $0x1], 0  ;;  %s1746_s12 = smov 0   ;;  %s1748_s13 = smov 0  }
   0x5   :  { %s1750_s14 = smov 0   ;;  %s1752_s15 = smov 0  }
   0x6 LB: > { %s1767_s16 = sadd.s32 4294967295, %s1717_s15   ;;  %s1350_s17 = sadd.s32 4294967294, %s1717_s15   ;;  %s1717_s15 = sphi %s1752_s15, %s1955_s15   ;;  %s1713_s14 = sphi %s1750_s14, %s1954_s14   ;;  %s1709_s13 = sphi %s1748_s13, %s1953_s13   ;;  %s1705_s12 = sphi %s1746_s12, %s1952_s12  }
   0x7   : > { %p40_p0 = scmp.ne.s32.totalorder %s1709_s13, %s1705_s12  ;;  %p1934_p1 = scmp.eq.s32.totalorder %s1767_s16, 0 }
   0x8   : > { %p112_p3 = scmp.eq.s32.totalorder %s1350_s17, 1  ;;  %p1351_p5 = scmp.ge.s32.totalorder %s1717_s15, 1 }
   0x9   : > { %p1776_p4 = por %p1934_p1, %p40_p0  ;;  %p119_p7 = scmp.lt.s32.totalorder %s1717_s15, 3 }
   0xa   : > { %p1781_p6 = por %p112_p3, %p40_p0  ;;  %s1719_s21 = smov [#allocation5]  }
   0xb   : > { %s1938_s18 = scalar_select %p1776_p4, 1, 0 }
   0xc   : > { %s1939_s19 = scalar_select %p1781_p6, 1, 0 }
   0xd   : > { %p1786_p8 = pnand %p1351_p5, %p119_p7  ;;  %s132_s22 = sshll.u32 %s1719_s21, 4  ;;  %s133_s22 = int_to_ptr.vmem [resolvable:$true] %s132_s22 }
   0xe   : > { %s1720_s23 = smov [#allocation7]   ;;  %s1580_s26 = scalar_lea.vmem %s133_s22, 64 }
   0xf   : > { %s1940_s20 = scalar_select %p1786_p8, 1, 0 }
  0x10   : > { %p1511_p10 = pneg %p1786_p8  ;;  %s142_s24 = sshll.u32 %s1720_s23, 4  ;;  %s143_s24 = int_to_ptr.vmem [resolvable:$true] %s142_s24 }
  0x11   : > { %p1581_p13 = scmp.ne.s32.totalorder %s133_s22, %s1580_s26  ;;  %p1588_p5 = scmp.lt.s32.totalorder %s133_s22, %s133_s22 }
  0x12   : > { %p1795_p11 = pnand %p1511_p10, %p1934_p1  ;;  %p1589_p7 = scmp.lt.s32.totalorder %s1580_s26, %s1580_s26 }
  0x14   : > { %p1571_p12 = pneg %p1795_p11  ;;  %p1590_p9 = por %p1589_p7, %p1588_p5 }
  0x16   : > { %p1583_p0 = pnand %p1581_p13, %p1571_p12 }
  0x18   : > { %p1584_p3 = pneg %p1583_p0 }
  0x1a   : > { %p1591_p2 = pnand %p1590_p9, %p1584_p3 }
  0x1c   : > { %1594 = shalt.err (!%p1591_p2)
}
  0x1d   : > { %1514 = dma.hbm_to_vmem [thread:$0]  (!%p1795_p11), %s1931_s1, 64, %s133_s22, [#allocation6]  }
  0x1e   : > { %s1606_s29 = scalar_lea.vmem %s143_s24, 16384  ;;  %p1614_p13 = scmp.lt.s32.totalorder %s143_s24, %s143_s24 }
  0x1f   : > { %p1607_p10 = scmp.ne.s32.totalorder %s143_s24, %s1606_s29  ;;  %p1615_p0 = scmp.lt.s32.totalorder %s1606_s29, %s1606_s29 }
  0x21   : > { %p1609_p1 = pnand %p1607_p10, %p1571_p12  ;;  %p1616_p4 = por %p1615_p0, %p1614_p13 }
  0x23   : > { %p1610_p6 = pneg %p1609_p1 }
  0x25   : > { %p1617_p8 = pnand %p1616_p4, %p1610_p6 }
  0x27   : > { %1620 = shalt.err (!%p1617_p8)
}
  0x28   : > { %s1721_s30 = smov 512   ;;  %s1722_s4 = smov 32  }
  0x29   : > { %1517 = dma.hbm_to_vmem [thread:$0]  (!%p1795_p11), %s1932_s2, 16384, %s143_s24, [#allocation6], %s1721_s30, %s1721_s30, %s1722_s4  }
  0x2a   : > { %s1818_s7 = sadd.s32 1, %s1717_s15   ;;  %s27_s8 = sadd.s32 1, %s1713_s14 }
  0x2b   : > { %s24_s9 = ssub.s32 %s1717_s15, %s1818_s7  ;;  %p34_p1 = scmp.ne.s32.totalorder %s1713_s14, %s1709_s13 }
  0x2c   : > { %p25_p2 = scmp.eq.s32.totalorder %s24_s9, 0  ;;  %p35_p4 = scmp.eq.s32.totalorder %s1717_s15, 0 }
  0x2d   : > { %p1942_p6 = scmp.eq.s32.totalorder %s1767_s16, 1  ;;  %p1528_p9 = scmp.lt.s32.totalorder %s1717_s15, 2 }
  0x2e   : > { %s1834_s11 = scalar_select %p25_p2, %s1713_s14, %s27_s8  }
  0x2f   : > { %p1828_p8 = por %p1942_p6, %p34_p1  ;;  %p36_p12 = por %p35_p4, %p34_p1 }
  0x30   : > { %s156_s17 = sand.u32 1, %s1713_s14   ;;  %s1497_s22 = sshll.u32 %s1717_s15, 8 }
  0x31   : > { %s1943_s10 = scalar_select %p1828_p8, 1, 0 }
  0x32   : > { %s1355_s21 = sshll.u32 %s156_s17, 4  ;;  %s1841_s25 = scalar_lea.hbm %s1930_s0, %s1497_s22 }
  0x33   : > { %s160_s26 = scalar_lea.vmem [#allocation2], %s1355_s21  ;;  %p1843_p11 = pnand %p1528_p9, %p36_p12 }
  0x34   : > { %s168_s27 = sshll.u32 %s160_s26, 4  ;;  %s157_s29 = scalar_lea.sflag [#allocation3], %s156_s17  ;;  %s169_s27 = int_to_ptr.vmem [resolvable:$true] %s168_s27 }
  0x35   : > { %s1621_s30 = scalar_lea.hbm %s1841_s25, 256  ;;  %p1623_p5 = pneg %p1843_p11 }
  0x36   : > { %p1622_p3 = scmp.ne.s32.totalorder %s1841_s25, %s1621_s30  ;;  %s1626_s6 = scalar_lea.hbm %s1930_s0, 512 }
  0x37   : > { %p1627_p13 = scmp.lt.s32.totalorder %s1841_s25, %s1930_s0  ;;  %p1628_p0 = scmp.lt.s32.totalorder %s1626_s6, %s1621_s30 }
  0x38   : > { %p1624_p7 = pnand %p1623_p5, %p1622_p3 }
  0x39   : > { %p1629_p1 = por %p1628_p0, %p1627_p13 }
  0x3a   : > { %p1625_p10 = pneg %p1624_p7 }
  0x3c   : > { %p1630_p2 = pnand %p1629_p1, %p1625_p10 }
  0x3e   : > { %1633 = shalt.err (!%p1630_p2)
}
  0x3f   : > { %s1634_s21 = scalar_lea.vmem %s169_s27, 256  ;;  %s1723_s17 = smov [#allocation2]  }
  0x40   : > { %p1635_p4 = scmp.ne.s32.totalorder %s169_s27, %s1634_s21  ;;  %s1639_s22 = sshll.u32 %s1723_s17, 4  ;;  %s1640_s22 = int_to_ptr.vmem [resolvable:$false] %s1639_s22 }
  0x41   : > { %s1641_s23 = scalar_lea.vmem %s1640_s22, 512  ;;  %p1642_p12 = scmp.lt.s32.totalorder %s169_s27, %s1640_s22 }
  0x42   : > { %p1637_p6 = pnand %p1635_p4, %p1623_p5  ;;  %p1643_p3 = scmp.lt.s32.totalorder %s1641_s23, %s1634_s21 }
  0x44   : > { %p1638_p9 = pneg %p1637_p6  ;;  %p1644_p7 = por %p1643_p3, %p1642_p12 }
  0x46   : > { %p1645_p8 = pnand %p1644_p7, %p1638_p9 }
  0x48   : > { %1648 = shalt.err (!%p1645_p8)
}
  0x49   : > { %1521 = dma.hbm_to_vmem [thread:$0]  (!%p1843_p11), %s1841_s25, 256, %s169_s27, %s157_s29  }
  0x4a   : > { %p1945_p10 = scmp.ne.s32.totalorder %s1940_s20, 0 }
  0x4b   : > { %s1864_s24 = sand.u32 (!%p1945_p10), 1, %s1709_s13   ;;  %p1946_p5 = scmp.ne.s32.totalorder (!%p1945_p10), %s1938_s18, 0 }
  0x4c   : > { %177 = sbr.rel (%p1945_p10) target bundleno = 561 (0x231), region = 32  ;;  %s1359_s26 = sshll.u32 (!%p1945_p10), %s1864_s24, 4 }
  0x4d   : > { %s180_s30 = scalar_lea.sflag (!%p1945_p10), [#allocation3], %s1864_s24  ;;  %s183_s4 = scalar_lea.vmem (!%p1945_p10), [#allocation2], %s1359_s26 }
  0x51   : > { %1692 = dma.done.wait (%p1946_p5), %s180_s30, 256  }
  0x52   : > { %1694 = vsyncadd (%p1946_p5), %s180_s30, 4294967040  ;;  %p1947_p8 = scmp.eq.s32.totalorder %s1767_s16, 0 }
  0x54   : > { %1696 = dma.done.wait (%p1947_p8), [#allocation6], 16448   ;;  %p1948_p11 = pmov %p1947_p8 }
  0x55   : > { %v1724_v0 = vmov 0.0   ;;  %v216_v1 = vld [vmem:[%s183_s4 + $0x8] sm:$0xff]  ;;  %v215_v2 = vld [vmem:[%s183_s4] sm:$0xff]  ;;  %vm217_vm0 = vcmask 64512   ;;  %s1362_s18 = sshll.u32 %s1864_s24, 5  ;;  %s1498_s25 = sshll.u32 %s1767_s16, 9 }
  0x56   : > { %1698 = vsyncadd (%p1948_p11), [#allocation6], 4294950848  ;;  %285 = vmatprep.mubr.f32.mxu0 %v1724_v0  ;;  %v214_v3 = vld [vmem:[#allocation5] sm:$0xf]  ;;  %251 = vmatprep.subr.mxu0 %v216_v1  ;;  %v350_v4 = vld [vmem:[#allocation7 + $0x1c0] sm:$0xff]  ;;  %s213_s20 = scalar_lea.vmem [#allocation8], %s1362_s18  ;;  %s1887_s5 = scalar_lea.hbm %s1933_s3, %s1498_s25 }
  0x57   : > { %v354_v5 = vld [vmem:[#allocation7 + $0x1e0] sm:$0xff]  ;;  %v351_v6 = vld [vmem:[#allocation7 + $0x1c8] sm:$0xff]  ;;  %252 = vmatpush1.msra.mxu0 %v215_v2  ;;  %s1261_s27 = sshll.u32 %s213_s20, 4  ;;  %s1247_s16 = scalar_lea.sflag [#allocation4], %s1864_s24  ;;  %s1889_s27 = int_to_ptr.vmem [resolvable:$true] %s1261_s27 }
  0x58   : > { %v1421_v7 = vcombine.high %v350_v4, %v354_v5  ;;  %v355_v8 = vld [vmem:[#allocation7 + $0x1e8] sm:$0xff]  ;;  %v1420_v9 = vcombine.low %v350_v4, %v354_v5  ;;  %v342_v10 = vld [vmem:[#allocation7 + $0x180] sm:$0xff]  ;;  %1363 = vmatmul.mubr.msk.f32.vlgmr.msra.gmra.mxu0 %vm217_vm0, %v214_v3  ;;  %s1649_s6 = scalar_lea.vmem %s1889_s27, 512  ;;  %p1949_p0 = scmp.ne.s32.totalorder %s1943_s10, 0 }
  0x59   : > { %v346_v11 = vld [vmem:[#allocation7 + $0x1a0] sm:$0xff]  ;;  %v1422_v12 = vcombine.low %v351_v6, %v355_v8  ;;  %v1423_v13 = vcombine.high %v351_v6, %v355_v8  ;;  %v343_v15 = vld [vmem:[#allocation7 + $0x188] sm:$0xff]  ;;  %p1650_p13 = scmp.ne.s32.totalorder %s1889_s27, %s1649_s6  ;;  %s1725_s8 = smov [#allocation8]  }
  0x5a   : > { %v1413_v14 = vcombine.high %v342_v10, %v346_v11  ;;  %v347_v16 = vld [vmem:[#allocation7 + $0x1a8] sm:$0xff]  ;;  %v334_v17 = vld [vmem:[#allocation7 + $0x140] sm:$0xff]  ;;  %1062 = vmatprep.subr.bf16.mxu1 %v1421_v7  ;;  %v1412_v22 = vcombine.low %v342_v10, %v346_v11  ;;  %s1653_s9 = sshll.u32 %s1725_s8, 4  ;;  %s1654_s9 = int_to_ptr.vmem [resolvable:$false] %s1653_s9 }
  0x5b   : > { %v1415_v18 = vcombine.high %v343_v15, %v347_v16  ;;  %v338_v19 = vld [vmem:[#allocation7 + $0x160] sm:$0xff]  ;;  %v335_v20 = vld [vmem:[#allocation7 + $0x148] sm:$0xff]  ;;  %1103 = vmatprep.subr.bf16.mxu0 %v1423_v13  ;;  %1063 = vmatpush1.bf16.msra.mxu1 %v1420_v9  ;;  %v1414_v23 = vcombine.low %v343_v15, %v347_v16  ;;  %p1651_p1 = pnand %p1650_p13, %p1949_p0  ;;  %s1655_s21 = scalar_lea.vmem %s1654_s9, 1024 }
  0x5c   : > { %v339_v21 = vld [vmem:[#allocation7 + $0x168] sm:$0xff]  ;;  %1104 = vmatpush1.bf16.msra.mxu0 %v1422_v12  ;;  %1064 = vmatprep.subr.bf16.mxu1 %v1413_v14  ;;  %v1405_v24 = vcombine.high %v334_v17, %v338_v19  ;;  %v326_v26 = vld [vmem:[#allocation7 + $0x100] sm:$0xff]  ;;  %v1404_v30 = vcombine.low %v334_v17, %v338_v19  ;;  %p1656_p4 = scmp.lt.s32.totalorder %s1889_s27, %s1654_s9  ;;  %p1657_p6 = scmp.lt.s32.totalorder %s1655_s21, %s1649_s6 }
  0x5d   : > { %1105 = vmatprep.subr.bf16.mxu0 %v1415_v18  ;;  %v1407_v25 = vcombine.high %v335_v20, %v339_v21  ;;  %v330_v27 = vld [vmem:[#allocation7 + $0x120] sm:$0xff]  ;;  %v327_v28 = vld [vmem:[#allocation7 + $0x108] sm:$0xff]  ;;  %v1406_v31 = vcombine.low %v335_v20, %v339_v21  ;;  %p1652_p2 = pneg %p1651_p1 }
  0x5e   : > { %v331_v29 = vld [vmem:[#allocation7 + $0x128] sm:$0xff]  ;;  %v1397_v32 = vcombine.high %v326_v26, %v330_v27  ;;  %v318_v34 = vld [vmem:[#allocation7 + $0xc0] sm:$0xff]  ;;  %v1396_v38 = vcombine.low %v326_v26, %v330_v27  ;;  %p1658_p9 = por %p1657_p6, %p1656_p4 }
  0x5f   : > { %1065 = vmatpush1.bf16.msra.mxu1 %v1412_v22  ;;  %v1399_v33 = vcombine.high %v327_v28, %v331_v29  ;;  %v322_v35 = vld [vmem:[#allocation7 + $0xe0] sm:$0xff]  ;;  %v319_v36 = vld [vmem:[#allocation7 + $0xc8] sm:$0xff]  ;;  %v1398_v39 = vcombine.low %v327_v28, %v331_v29 }
  0x60   : > { %1106 = vmatpush1.bf16.msra.mxu0 %v1414_v23  ;;  %1066 = vmatprep.subr.bf16.mxu1 %v1405_v24  ;;  %v323_v37 = vld [vmem:[#allocation7 + $0xe8] sm:$0xff]  ;;  %v1389_v40 = vcombine.high %v318_v34, %v322_v35  ;;  %v310_v42 = vld [vmem:[#allocation7 + $0x80] sm:$0xff]  ;;  %v1388_v46 = vcombine.low %v318_v34, %v322_v35  ;;  %p1659_p12 = pnand %p1658_p9, %p1652_p2 }
  0x61   : > { %1107 = vmatprep.subr.bf16.mxu0 %v1407_v25  ;;  %v1391_v41 = vcombine.high %v319_v36, %v323_v37  ;;  %v314_v43 = vld [vmem:[#allocation7 + $0xa0] sm:$0xff]  ;;  %v311_v44 = vld [vmem:[#allocation7 + $0x88] sm:$0xff]  ;;  %v1390_v47 = vcombine.low %v319_v36, %v323_v37 }
  0x62   : > { %v315_v45 = vld [vmem:[#allocation7 + $0xa8] sm:$0xff]  ;;  %v1381_v48 = vcombine.high %v310_v42, %v314_v43  ;;  %v302_v50 = vld [vmem:[#allocation7 + $0x40] sm:$0xff]  ;;  %v1380_v54 = vcombine.low %v310_v42, %v314_v43 }
  0x63   : > { %1067 = vmatpush1.bf16.msra.mxu1 %v1404_v30  ;;  %v1383_v49 = vcombine.high %v311_v44, %v315_v45  ;;  %v306_v51 = vld [vmem:[#allocation7 + $0x60] sm:$0xff]  ;;  %v303_v52 = vld [vmem:[#allocation7 + $0x48] sm:$0xff]  ;;  %v1382_v55 = vcombine.low %v311_v44, %v315_v45 }
  0x64   : > { %1108 = vmatpush1.bf16.msra.mxu0 %v1406_v31  ;;  %1068 = vmatprep.subr.bf16.mxu1 %v1397_v32  ;;  %v307_v53 = vld [vmem:[#allocation7 + $0x68] sm:$0xff]  ;;  %v1373_v56 = vcombine.high %v302_v50, %v306_v51  ;;  %v294_v58 = vld [vmem:[#allocation7] sm:$0xff]  ;;  %v1372_v62 = vcombine.low %v302_v50, %v306_v51 }
  0x65   : > { %1109 = vmatprep.subr.bf16.mxu0 %v1399_v33  ;;  %v1375_v57 = vcombine.high %v303_v52, %v307_v53  ;;  %v298_v59 = vld [vmem:[#allocation7 + $0x20] sm:$0xff]  ;;  %v295_v60 = vld [vmem:[#allocation7 + $0x8] sm:$0xff]  ;;  %v1374_v63 = vcombine.low %v303_v52, %v307_v53 }
  0x66   : > { %v299_v61 = vld [vmem:[#allocation7 + $0x28] sm:$0xff]  ;;  %v1365_v0 = vcombine.high %v294_v58, %v298_v59  ;;  %v414_v2 = vld [vmem:[#allocation7 + $0x3c0] sm:$0xff]  ;;  %v1364_v6 = vcombine.low %v294_v58, %v298_v59 }
  0x67   : > { %1069 = vmatpush1.bf16.msra.mxu1 %v1396_v38  ;;  %v1367_v1 = vcombine.high %v295_v60, %v299_v61  ;;  %v418_v3 = vld [vmem:[#allocation7 + $0x3e0] sm:$0xff]  ;;  %v415_v4 = vld [vmem:[#allocation7 + $0x3c8] sm:$0xff]  ;;  %v1366_v7 = vcombine.low %v295_v60, %v299_v61 }
  0x68   : > { %1110 = vmatpush1.bf16.msra.mxu0 %v1398_v39  ;;  %1070 = vmatprep.subr.bf16.mxu1 %v1389_v40  ;;  %v419_v5 = vld [vmem:[#allocation7 + $0x3e8] sm:$0xff]  ;;  %v1485_v8 = vcombine.high %v414_v2, %v418_v3  ;;  %v406_v10 = vld [vmem:[#allocation7 + $0x380] sm:$0xff]  ;;  %v1484_v14 = vcombine.low %v414_v2, %v418_v3 }
  0x69   : > { %1111 = vmatprep.subr.bf16.mxu0 %v1391_v41  ;;  %v1487_v9 = vcombine.high %v415_v4, %v419_v5  ;;  %v410_v11 = vld [vmem:[#allocation7 + $0x3a0] sm:$0xff]  ;;  %v407_v12 = vld [vmem:[#allocation7 + $0x388] sm:$0xff]  ;;  %v1486_v15 = vcombine.low %v415_v4, %v419_v5  ;;  %v352_v4 = vld [vmem:[#allocation7 + $0x1d0] sm:$0xff] }
  0x6a   : > { %v411_v13 = vld [vmem:[#allocation7 + $0x3a8] sm:$0xff]  ;;  %v1477_v16 = vcombine.high %v406_v10, %v410_v11  ;;  %v398_v18 = vld [vmem:[#allocation7 + $0x340] sm:$0xff]  ;;  %v1476_v22 = vcombine.low %v406_v10, %v410_v11  ;;  %v356_v5 = vld [vmem:[#allocation7 + $0x1f0] sm:$0xff] }
  0x6b   : > { %1071 = vmatpush1.bf16.msra.mxu1 %v1388_v46  ;;  %v1479_v17 = vcombine.high %v407_v12, %v411_v13  ;;  %v402_v19 = vld [vmem:[#allocation7 + $0x360] sm:$0xff]  ;;  %v399_v20 = vld [vmem:[#allocation7 + $0x348] sm:$0xff]  ;;  %v1478_v23 = vcombine.low %v407_v12, %v411_v13  ;;  %v344_v13 = vld [vmem:[#allocation7 + $0x190] sm:$0xff] }
  0x6c   : > { %1112 = vmatpush1.bf16.msra.mxu0 %v1390_v47  ;;  %1072 = vmatprep.subr.bf16.mxu1 %v1381_v48  ;;  %v403_v21 = vld [vmem:[#allocation7 + $0x368] sm:$0xff]  ;;  %v1469_v24 = vcombine.high %v398_v18, %v402_v19  ;;  %v390_v26 = vld [vmem:[#allocation7 + $0x300] sm:$0xff]  ;;  %v1468_v30 = vcombine.low %v398_v18, %v402_v19 }
  0x6d   : > { %1113 = vmatprep.subr.bf16.mxu0 %v1383_v49  ;;  %v1471_v25 = vcombine.high %v399_v20, %v403_v21  ;;  %v394_v27 = vld [vmem:[#allocation7 + $0x320] sm:$0xff]  ;;  %v391_v28 = vld [vmem:[#allocation7 + $0x308] sm:$0xff]  ;;  %v1470_v31 = vcombine.low %v399_v20, %v403_v21  ;;  %v336_v20 = vld [vmem:[#allocation7 + $0x150] sm:$0xff] }
  0x6e   : > { %v395_v29 = vld [vmem:[#allocation7 + $0x328] sm:$0xff]  ;;  %v1461_v32 = vcombine.high %v390_v26, %v394_v27  ;;  %v382_v34 = vld [vmem:[#allocation7 + $0x2c0] sm:$0xff]  ;;  %v1460_v38 = vcombine.low %v390_v26, %v394_v27 }
  0x6f   : > { %1073 = vmatpush1.bf16.msra.mxu1 %v1380_v54  ;;  %v1463_v33 = vcombine.high %v391_v28, %v395_v29  ;;  %v386_v35 = vld [vmem:[#allocation7 + $0x2e0] sm:$0xff]  ;;  %v383_v36 = vld [vmem:[#allocation7 + $0x2c8] sm:$0xff]  ;;  %v1462_v39 = vcombine.low %v391_v28, %v395_v29 }
  0x70   : > { %1114 = vmatpush1.bf16.msra.mxu0 %v1382_v55  ;;  %1074 = vmatprep.subr.bf16.mxu1 %v1373_v56  ;;  %v387_v37 = vld [vmem:[#allocation7 + $0x2e8] sm:$0xff]  ;;  %v1453_v40 = vcombine.high %v382_v34, %v386_v35  ;;  %v374_v42 = vld [vmem:[#allocation7 + $0x280] sm:$0xff]  ;;  %v1452_v46 = vcombine.low %v382_v34, %v386_v35 }
  0x71   : > { %1115 = vmatprep.subr.bf16.mxu0 %v1375_v57  ;;  %v1455_v41 = vcombine.high %v383_v36, %v387_v37  ;;  %v378_v43 = vld [vmem:[#allocation7 + $0x2a0] sm:$0xff]  ;;  %v375_v44 = vld [vmem:[#allocation7 + $0x288] sm:$0xff]  ;;  %v1454_v47 = vcombine.low %v383_v36, %v387_v37 }
  0x72   : > { %v379_v45 = vld [vmem:[#allocation7 + $0x2a8] sm:$0xff]  ;;  %v1445_v48 = vcombine.high %v374_v42, %v378_v43  ;;  %v366_v50 = vld [vmem:[#allocation7 + $0x240] sm:$0xff]  ;;  %v1444_v54 = vcombine.low %v374_v42, %v378_v43 }
  0x73   : > { %1075 = vmatpush1.bf16.msra.mxu1 %v1372_v62  ;;  %v1447_v49 = vcombine.high %v375_v44, %v379_v45  ;;  %v370_v51 = vld [vmem:[#allocation7 + $0x260] sm:$0xff]  ;;  %v367_v52 = vld [vmem:[#allocation7 + $0x248] sm:$0xff]  ;;  %v1446_v55 = vcombine.low %v375_v44, %v379_v45 }
  0x74   : > { %1116 = vmatpush1.bf16.msra.mxu0 %v1374_v63  ;;  %1076 = vmatprep.subr.bf16.mxu1 %v1365_v0  ;;  %v371_v53 = vld [vmem:[#allocation7 + $0x268] sm:$0xff]  ;;  %v1437_v56 = vcombine.high %v366_v50, %v370_v51  ;;  %v1436_v58 = vcombine.low %v366_v50, %v370_v51  ;;  %v358_v60 = vld [vmem:[#allocation7 + $0x200] sm:$0xff] }
  0x75   : > { %1117 = vmatprep.subr.bf16.mxu0 %v1367_v1  ;;  %v1439_v57 = vcombine.high %v367_v52, %v371_v53  ;;  %v1438_v59 = vcombine.low %v367_v52, %v371_v53  ;;  %v362_v61 = vld [vmem:[#allocation7 + $0x220] sm:$0xff]  ;;  %v359_v62 = vld [vmem:[#allocation7 + $0x208] sm:$0xff] }
  0x76   : > { %v1429_v63 = vcombine.high %v358_v60, %v362_v61  ;;  %v363_v0 = vld [vmem:[#allocation7 + $0x228] sm:$0xff]  ;;  %v1428_v3 = vcombine.low %v358_v60, %v362_v61 }
  0x77   : > { %1077 = vmatpush1.bf16.msra.mxu1 %v1364_v6  ;;  %v1430_v1 = vcombine.low %v359_v62, %v363_v0  ;;  %v1431_v2 = vcombine.high %v359_v62, %v363_v0  ;;  %v353_v6 = vld [vmem:[#allocation7 + $0x1d8] sm:$0xff]  ;;  %v296_v62 = vld [vmem:[#allocation7 + $0x10] sm:$0xff] }
  0x78   : > { %1118 = vmatpush1.bf16.msra.mxu0 %v1366_v7  ;;  %1078 = vmatprep.subr.bf16.mxu1 %v1485_v8  ;;  %v1425_v7 = vcombine.high %v352_v4, %v356_v5  ;;  %v357_v8 = vld [vmem:[#allocation7 + $0x1f8] sm:$0xff] }
  0x79   : > { %1119 = vmatprep.subr.bf16.mxu0 %v1487_v9  ;;  %v1424_v9 = vcombine.low %v352_v4, %v356_v5  ;;  %v1426_v10 = vcombine.low %v353_v6, %v357_v8  ;;  %v1427_v11 = vcombine.high %v353_v6, %v357_v8  ;;  %v297_v0 = vld [vmem:[#allocation7 + $0x18] sm:$0xff]  ;;  %v416_v6 = vld [vmem:[#allocation7 + $0x3d0] sm:$0xff] }
  0x7a   : > { %v417_v8 = vld [vmem:[#allocation7 + $0x3d8] sm:$0xff] }
  0x7b   : > { %1079 = vmatpush2.bf16.msra.mxu1 %v1484_v14 }
  0x7c   : > { %1120 = vmatpush2.bf16.msra.mxu0 %v1486_v15  ;;  %1080 = vmatprep.subr.bf16.mxu1 %v1477_v16  ;;  %v348_v15 = vld [vmem:[#allocation7 + $0x1b0] sm:$0xff]  ;;  %v345_v16 = vld [vmem:[#allocation7 + $0x198] sm:$0xff] }
  0x7d   : > { %1121 = vmatprep.subr.bf16.mxu0 %v1479_v17  ;;  %v349_v17 = vld [vmem:[#allocation7 + $0x1b8] sm:$0xff]  ;;  %v1417_v21 = vcombine.high %v344_v13, %v348_v15  ;;  %v1416_v26 = vcombine.low %v344_v13, %v348_v15  ;;  %v412_v15 = vld [vmem:[#allocation7 + $0x3b0] sm:$0xff] }
  0x7e   : > { %v1418_v27 = vcombine.low %v345_v16, %v349_v17 }
  0x7f   : > { %1081 = vmatpush2.bf16.msra.mxu1 %v1476_v22  ;;  %v1419_v22 = vcombine.high %v345_v16, %v349_v17  ;;  %v409_v16 = vld [vmem:[#allocation7 + $0x398] sm:$0xff] }
  0x80   : > { %1122 = vmatpush2.bf16.msra.mxu0 %v1478_v23  ;;  %1082 = vmatprep.subr.bf16.mxu1 %v1469_v24  ;;  %v340_v23 = vld [vmem:[#allocation7 + $0x170] sm:$0xff]  ;;  %v337_v24 = vld [vmem:[#allocation7 + $0x158] sm:$0xff] }
  0x81   : > { %1123 = vmatprep.subr.bf16.mxu0 %v1471_v25  ;;  %v341_v25 = vld [vmem:[#allocation7 + $0x178] sm:$0xff]  ;;  %v1409_v28 = vcombine.high %v336_v20, %v340_v23  ;;  %v1408_v34 = vcombine.low %v336_v20, %v340_v23  ;;  %v400_v23 = vld [vmem:[#allocation7 + $0x350] sm:$0xff] }
  0x82   : > { %v1411_v29 = vcombine.high %v337_v24, %v341_v25  ;;  %v1410_v35 = vcombine.low %v337_v24, %v341_v25  ;;  %v413_v17 = vld [vmem:[#allocation7 + $0x3b8] sm:$0xff]  ;;  %v404_v24 = vld [vmem:[#allocation7 + $0x370] sm:$0xff] }
  0x83   : > { %1083 = vmatpush2.bf16.msra.mxu1 %v1468_v30  ;;  %v328_v30 = vld [vmem:[#allocation7 + $0x110] sm:$0xff]  ;;  %v401_v25 = vld [vmem:[#allocation7 + $0x358] sm:$0xff] }
  0x84   : > { %1124 = vmatpush2.bf16.msra.mxu0 %v1470_v31  ;;  %1084 = vmatprep.subr.bf16.mxu1 %v1461_v32  ;;  %v332_v31 = vld [vmem:[#allocation7 + $0x130] sm:$0xff]  ;;  %v329_v32 = vld [vmem:[#allocation7 + $0x118] sm:$0xff] }
  0x85   : > { %1125 = vmatprep.subr.bf16.mxu0 %v1463_v33  ;;  %v333_v33 = vld [vmem:[#allocation7 + $0x138] sm:$0xff]  ;;  %v1401_v36 = vcombine.high %v328_v30, %v332_v31  ;;  %v1400_v42 = vcombine.low %v328_v30, %v332_v31  ;;  %v392_v31 = vld [vmem:[#allocation7 + $0x310] sm:$0xff] }
  0x86   : > { %v1403_v37 = vcombine.high %v329_v32, %v333_v33  ;;  %v1402_v43 = vcombine.low %v329_v32, %v333_v33  ;;  %v396_v32 = vld [vmem:[#allocation7 + $0x330] sm:$0xff]  ;;  %v393_v33 = vld [vmem:[#allocation7 + $0x318] sm:$0xff] }
  0x87   : > { %1085 = vmatpush2.bf16.msra.mxu1 %v1460_v38  ;;  %v320_v38 = vld [vmem:[#allocation7 + $0xd0] sm:$0xff] }
  0x88   : > { %1126 = vmatpush2.bf16.msra.mxu0 %v1462_v39  ;;  %1086 = vmatprep.subr.bf16.mxu1 %v1453_v40  ;;  %v324_v39 = vld [vmem:[#allocation7 + $0xf0] sm:$0xff]  ;;  %v321_v40 = vld [vmem:[#allocation7 + $0xd8] sm:$0xff] }
  0x89   : > { %1127 = vmatprep.subr.bf16.mxu0 %v1455_v41  ;;  %v325_v41 = vld [vmem:[#allocation7 + $0xf8] sm:$0xff]  ;;  %v1393_v44 = vcombine.high %v320_v38, %v324_v39  ;;  %v1392_v50 = vcombine.low %v320_v38, %v324_v39  ;;  %v384_v39 = vld [vmem:[#allocation7 + $0x2d0] sm:$0xff] }
  0x8a   : > { %v1395_v45 = vcombine.high %v321_v40, %v325_v41  ;;  %v1394_v51 = vcombine.low %v321_v40, %v325_v41  ;;  %v388_v40 = vld [vmem:[#allocation7 + $0x2f0] sm:$0xff]  ;;  %v385_v41 = vld [vmem:[#allocation7 + $0x2d8] sm:$0xff] }
  0x8b   : > { %1087 = vmatpush2.bf16.msra.mxu1 %v1452_v46  ;;  %v312_v46 = vld [vmem:[#allocation7 + $0x90] sm:$0xff] }
  0x8c   : > { %1128 = vmatpush2.bf16.msra.mxu0 %v1454_v47  ;;  %1088 = vmatprep.subr.bf16.mxu1 %v1445_v48  ;;  %v316_v47 = vld [vmem:[#allocation7 + $0xb0] sm:$0xff]  ;;  %v313_v48 = vld [vmem:[#allocation7 + $0x98] sm:$0xff] }
  0x8d   : > { %1129 = vmatprep.subr.bf16.mxu0 %v1447_v49  ;;  %v317_v49 = vld [vmem:[#allocation7 + $0xb8] sm:$0xff]  ;;  %v1385_v52 = vcombine.high %v312_v46, %v316_v47 }
  0x8e   : > { %v1387_v53 = vcombine.high %v313_v48, %v317_v49 }
  0x8f   : > { %1089 = vmatpush2.bf16.msra.mxu1 %v1444_v54  ;;  %v304_v54 = vld [vmem:[#allocation7 + $0x50] sm:$0xff] }
  0x90   : > { %1130 = vmatpush2.bf16.msra.mxu0 %v1446_v55  ;;  %1090 = vmatprep.subr.bf16.mxu1 %v1437_v56  ;;  %v308_v55 = vld [vmem:[#allocation7 + $0x70] sm:$0xff]  ;;  %v305_v56 = vld [vmem:[#allocation7 + $0x58] sm:$0xff] }
  0x91   : > { %1131 = vmatprep.subr.bf16.mxu0 %v1439_v57  ;;  %v309_v57 = vld [vmem:[#allocation7 + $0x78] sm:$0xff]  ;;  %v1377_v60 = vcombine.high %v304_v54, %v308_v55 }
  0x92   : > { %v1379_v61 = vcombine.high %v305_v56, %v309_v57 }
  0x93   : > { %1091 = vmatpush2.bf16.msra.mxu1 %v1436_v58  ;;  %v1384_v58 = vcombine.low %v312_v46, %v316_v47  ;;  %v376_v47 = vld [vmem:[#allocation7 + $0x290] sm:$0xff] }
  0x94   : > { %1132 = vmatpush2.bf16.msra.mxu0 %v1438_v59  ;;  %1092 = vmatprep.subr.bf16.mxu1 %v1429_v63  ;;  %v1386_v59 = vcombine.low %v313_v48, %v317_v49  ;;  %v300_v63 = vld [vmem:[#allocation7 + $0x30] sm:$0xff]  ;;  %v377_v49 = vld [vmem:[#allocation7 + $0x298] sm:$0xff] }
  0x95   : > { %1133 = vmatprep.subr.bf16.mxu0 %v1431_v2  ;;  %v1376_v2 = vcombine.low %v304_v54, %v308_v55  ;;  %v1369_v4 = vcombine.high %v296_v62, %v300_v63  ;;  %v380_v48 = vld [vmem:[#allocation7 + $0x2b0] sm:$0xff] }
  0x96   : > { %v368_v55 = vld [vmem:[#allocation7 + $0x250] sm:$0xff] }
  0x97   : > { %1093 = vmatpush2.bf16.msra.mxu1 %v1428_v3  ;;  %v1378_v3 = vcombine.low %v305_v56, %v309_v57  ;;  %v372_v56 = vld [vmem:[#allocation7 + $0x270] sm:$0xff]  ;;  %v369_v57 = vld [vmem:[#allocation7 + $0x258] sm:$0xff] }
  0x98   : > { %1134 = vmatpush2.bf16.msra.mxu0 %v1430_v1  ;;  %1144 = vmatprep.subr.bf16.mxu1 %v1425_v7  ;;  %v301_v1 = vld [vmem:[#allocation7 + $0x38] sm:$0xff]  ;;  %v420_v7 = vld [vmem:[#allocation7 + $0x3f0] sm:$0xff] }
  0x99   : > { %1185 = vmatprep.subr.bf16.mxu0 %v1427_v11  ;;  %v1371_v5 = vcombine.high %v297_v0, %v301_v1  ;;  %v1370_v11 = vcombine.low %v297_v0, %v301_v1  ;;  %v364_v0 = vld [vmem:[#allocation7 + $0x230] sm:$0xff]  ;;  %v361_v1 = vld [vmem:[#allocation7 + $0x218] sm:$0xff] }
 0x118   : > { %v287_v12 = vpop.f32.mrf.mxu0 }
 0x119   : > { %v1876_v19 = vpack.c.bf16 %v287_v12, %v287_v12  ;;  %v1489_v12 = vcombine.high %v416_v6, %v420_v7 }
 0x11a   : > { %v289_v14 = vpop.f32.mrf.mxu0 }
 0x11b   : > { %v293_v18 = vpack.c.bf16 %v289_v14, %v289_v14  ;;  %v408_v14 = vld [vmem:[#allocation7 + $0x390] sm:$0xff] }
 0x11d   : > { %1094 = vmatprep.mubr.bf16.mxu1 %v293_v18  ;;  %1135 = vmatprep.mubr.bf16.mxu0 %v293_v18 }
 0x11e   : > { %1095 = vmatmul.mubr.bf16.vlgmr.msra.gmra.mxu1 %v1876_v19  ;;  %1136 = vmatmul.mubr.bf16.vlgmr.msra.gmra.mxu0 %v1876_v19 }
 0x11f   : > { %1145 = vmatpush1.bf16.msra.mxu1 %v1424_v9  ;;  %1186 = vmatpush1.bf16.msra.mxu0 %v1426_v10  ;;  %v421_v9 = vld [vmem:[#allocation7 + $0x3f8] sm:$0xff]  ;;  %v1368_v10 = vcombine.low %v296_v62, %v300_v63  ;;  %v360_v63 = vld [vmem:[#allocation7 + $0x210] sm:$0xff] }
 0x120   : > { %1176 = vmatprep.mubr.bf16.mxu1 %v293_v18  ;;  %1217 = vmatprep.mubr.bf16.mxu0 %v293_v18  ;;  %v1491_v13 = vcombine.high %v417_v8, %v421_v9  ;;  %v1488_v18 = vcombine.low %v416_v6, %v420_v7  ;;  %v1490_v20 = vcombine.low %v417_v8, %v421_v9 }
 0x121   : > { %1146 = vmatprep.subr.bf16.mxu1 %v1417_v21  ;;  %1187 = vmatprep.subr.bf16.mxu0 %v1419_v22  ;;  %v1481_v21 = vcombine.high %v408_v14, %v412_v15  ;;  %v1483_v22 = vcombine.high %v409_v16, %v413_v17  ;;  %v1432_v7 = vcombine.low %v360_v63, %v364_v0 }
 0x123   : > { %1147 = vmatpush1.bf16.msra.mxu1 %v1416_v26  ;;  %1188 = vmatpush1.bf16.msra.mxu0 %v1418_v27  ;;  %v405_v26 = vld [vmem:[#allocation7 + $0x378] sm:$0xff]  ;;  %v1480_v27 = vcombine.low %v408_v14, %v412_v15 }
 0x124   : > { %1148 = vmatprep.subr.bf16.mxu1 %v1409_v28  ;;  %1189 = vmatprep.subr.bf16.mxu0 %v1411_v29  ;;  %v1482_v28 = vcombine.low %v409_v16, %v413_v17  ;;  %v1473_v29 = vcombine.high %v400_v23, %v404_v24  ;;  %v1475_v30 = vcombine.high %v401_v25, %v405_v26 }
 0x127   : > { %1149 = vmatpush1.bf16.msra.mxu1 %v1408_v34  ;;  %1190 = vmatpush1.bf16.msra.mxu0 %v1410_v35  ;;  %v397_v34 = vld [vmem:[#allocation7 + $0x338] sm:$0xff]  ;;  %v1472_v35 = vcombine.low %v400_v23, %v404_v24 }
 0x128   : > { %1150 = vmatprep.subr.bf16.mxu1 %v1401_v36  ;;  %1191 = vmatprep.subr.bf16.mxu0 %v1403_v37  ;;  %v1474_v36 = vcombine.low %v401_v25, %v405_v26  ;;  %v1465_v37 = vcombine.high %v392_v31, %v396_v32  ;;  %v1467_v38 = vcombine.high %v393_v33, %v397_v34 }
 0x12b   : > { %1151 = vmatpush1.bf16.msra.mxu1 %v1400_v42  ;;  %1192 = vmatpush1.bf16.msra.mxu0 %v1402_v43  ;;  %v389_v42 = vld [vmem:[#allocation7 + $0x2f8] sm:$0xff]  ;;  %v1464_v43 = vcombine.low %v392_v31, %v396_v32 }
 0x12c   : > { %1152 = vmatprep.subr.bf16.mxu1 %v1393_v44  ;;  %1193 = vmatprep.subr.bf16.mxu0 %v1395_v45  ;;  %v1466_v44 = vcombine.low %v393_v33, %v397_v34  ;;  %v1457_v45 = vcombine.high %v384_v39, %v388_v40  ;;  %v1459_v46 = vcombine.high %v385_v41, %v389_v42 }
 0x12f   : > { %1153 = vmatpush1.bf16.msra.mxu1 %v1392_v50  ;;  %1194 = vmatpush1.bf16.msra.mxu0 %v1394_v51  ;;  %v381_v50 = vld [vmem:[#allocation7 + $0x2b8] sm:$0xff]  ;;  %v1456_v51 = vcombine.low %v384_v39, %v388_v40 }
 0x130   : > { %1154 = vmatprep.subr.bf16.mxu1 %v1385_v52  ;;  %1195 = vmatprep.subr.bf16.mxu0 %v1387_v53  ;;  %v1458_v52 = vcombine.low %v385_v41, %v389_v42  ;;  %v1449_v53 = vcombine.high %v376_v47, %v380_v48  ;;  %v1451_v54 = vcombine.high %v377_v49, %v381_v50 }
 0x133   : > { %1155 = vmatpush1.bf16.msra.mxu1 %v1384_v58  ;;  %1196 = vmatpush1.bf16.msra.mxu0 %v1386_v59  ;;  %v373_v58 = vld [vmem:[#allocation7 + $0x278] sm:$0xff]  ;;  %v1448_v59 = vcombine.low %v376_v47, %v380_v48 }
 0x134   : > { %1156 = vmatprep.subr.bf16.mxu1 %v1377_v60  ;;  %1197 = vmatprep.subr.bf16.mxu0 %v1379_v61  ;;  %v1450_v60 = vcombine.low %v377_v49, %v381_v50  ;;  %v1441_v61 = vcombine.high %v368_v55, %v372_v56  ;;  %v1443_v62 = vcombine.high %v369_v57, %v373_v58 }
 0x137   : > { %1157 = vmatpush1.bf16.msra.mxu1 %v1376_v2  ;;  %1198 = vmatpush1.bf16.msra.mxu0 %v1378_v3  ;;  %v365_v2 = vld [vmem:[#allocation7 + $0x238] sm:$0xff]  ;;  %v1440_v3 = vcombine.low %v368_v55, %v372_v56 }
 0x138   : > { %1158 = vmatprep.subr.bf16.mxu1 %v1369_v4  ;;  %1199 = vmatprep.subr.bf16.mxu0 %v1371_v5  ;;  %v1442_v4 = vcombine.low %v369_v57, %v373_v58  ;;  %v1433_v5 = vcombine.high %v360_v63, %v364_v0  ;;  %v1435_v6 = vcombine.high %v361_v1, %v365_v2 }
 0x139   : > { %v1434_v8 = vcombine.low %v361_v1, %v365_v2 }
 0x13b   : > { %1159 = vmatpush1.bf16.msra.mxu1 %v1368_v10  ;;  %1200 = vmatpush1.bf16.msra.mxu0 %v1370_v11 }
 0x13c   : > { %1160 = vmatprep.subr.bf16.mxu1 %v1489_v12  ;;  %1201 = vmatprep.subr.bf16.mxu0 %v1491_v13 }
 0x13f   : > { %1161 = vmatpush2.bf16.msra.mxu1 %v1488_v18  ;;  %1202 = vmatpush2.bf16.msra.mxu0 %v1490_v20 }
 0x140   : > { %1162 = vmatprep.subr.bf16.mxu1 %v1481_v21  ;;  %1203 = vmatprep.subr.bf16.mxu0 %v1483_v22 }
 0x143   : > { %1163 = vmatpush2.bf16.msra.mxu1 %v1480_v27  ;;  %1204 = vmatpush2.bf16.msra.mxu0 %v1482_v28 }
 0x144   : > { %1164 = vmatprep.subr.bf16.mxu1 %v1473_v29  ;;  %1205 = vmatprep.subr.bf16.mxu0 %v1475_v30 }
 0x147   : > { %1165 = vmatpush2.bf16.msra.mxu1 %v1472_v35  ;;  %1206 = vmatpush2.bf16.msra.mxu0 %v1474_v36 }
 0x148   : > { %1166 = vmatprep.subr.bf16.mxu1 %v1465_v37  ;;  %1207 = vmatprep.subr.bf16.mxu0 %v1467_v38 }
 0x14b   : > { %1167 = vmatpush2.bf16.msra.mxu1 %v1464_v43  ;;  %1208 = vmatpush2.bf16.msra.mxu0 %v1466_v44 }
 0x14c   : > { %1168 = vmatprep.subr.bf16.mxu1 %v1457_v45  ;;  %1209 = vmatprep.subr.bf16.mxu0 %v1459_v46 }
 0x14f   : > { %1169 = vmatpush2.bf16.msra.mxu1 %v1456_v51  ;;  %1210 = vmatpush2.bf16.msra.mxu0 %v1458_v52 }
 0x150   : > { %1170 = vmatprep.subr.bf16.mxu1 %v1449_v53  ;;  %1211 = vmatprep.subr.bf16.mxu0 %v1451_v54 }
 0x153   : > { %1171 = vmatpush2.bf16.msra.mxu1 %v1448_v59  ;;  %1212 = vmatpush2.bf16.msra.mxu0 %v1450_v60 }
 0x154   : > { %1172 = vmatprep.subr.bf16.mxu1 %v1441_v61  ;;  %1213 = vmatprep.subr.bf16.mxu0 %v1443_v62 }
 0x157   : > { %1173 = vmatpush2.bf16.msra.mxu1 %v1440_v3  ;;  %1214 = vmatpush2.bf16.msra.mxu0 %v1442_v4 }
 0x158   : > { %1174 = vmatprep.subr.bf16.mxu1 %v1433_v5  ;;  %1215 = vmatprep.subr.bf16.mxu0 %v1435_v6 }
 0x15b   : > { %1175 = vmatpush2.bf16.msra.mxu1 %v1432_v7  ;;  %1216 = vmatpush2.bf16.msra.mxu0 %v1434_v8 }
 0x15e   : > { %1177 = vmatmul.mubr.bf16.vlgmr.msra.gmra.mxu1 %v1876_v19  ;;  %1218 = vmatmul.mubr.bf16.vlgmr.msra.gmra.mxu0 %v1876_v19 }
 0x1de   : > { %v1096_v9 = vpop.f32.mrf.mxu1  ;;  %v1137_v10 = vpop.f32.mrf.mxu0 }
 0x1e0   : > { %v1098_v11 = vpop.f32.mrf.mxu1  ;;  %v1139_v12 = vpop.f32.mrf.mxu0 }
 0x1e1   : > { %v1234_v13 = vcombine.low %v1096_v9, %v1098_v11  ;;  %v1235_v14 = vcombine.low %v1137_v10, %v1139_v12 }
 0x1e2   : > { %v1100_v15 = vpop.f32.mrf.mxu1  ;;  %v1141_v16 = vpop.f32.mrf.mxu0 }
 0x1e3   : > { %1242 = vst [vmem:[%s213_s20] sm:$0xff] %v1234_v13  ;;  %1243 = vst [vmem:[%s213_s20 + $0x8] sm:$0xff] %v1235_v14 }
 0x1e4   : > { %v1101_v17 = vpop.f32.mrf.mxu1  ;;  %v1142_v18 = vpop.f32.mrf.mxu0 }
 0x21e   : > { %v1178_v20 = vpop.f32.mrf.mxu1  ;;  %v1219_v21 = vpop.f32.mrf.mxu0 }
 0x220   : > { %v1180_v19 = vpop.f32.mrf.mxu1  ;;  %v1221_v22 = vpop.f32.mrf.mxu0 }
 0x221   : > { %v1236_v23 = vcombine.low %v1178_v20, %v1180_v19  ;;  %v1237_v24 = vcombine.low %v1219_v21, %v1221_v22 }
 0x222   : > { %v1182_v25 = vpop.f32.mrf.mxu1  ;;  %v1223_v26 = vpop.f32.mrf.mxu0 }
 0x223   : > { %1244 = vst [vmem:[%s213_s20 + $0x10] sm:$0xff] %v1236_v23  ;;  %1245 = vst [vmem:[%s213_s20 + $0x18] sm:$0xff] %v1237_v24 }
 0x224   : > { %v1183_v27 = vpop.f32.mrf.mxu1  ;;  %v1224_v28 = vpop.f32.mrf.mxu0 }
 0x225   : > { %1662 = shalt.err (!%p1659_p12)
}
 0x226   : > { %s1663_s17 = scalar_lea.hbm %s1887_s5, 512  ;;  %s1667_s24 = scalar_lea.hbm %s1933_s3, 1024 }
 0x227   : > { %p1664_p3 = scmp.ne.s32.totalorder %s1887_s5, %s1663_s17  ;;  %p1668_p5 = scmp.lt.s32.totalorder %s1887_s5, %s1933_s3 }
 0x228   : > { %p1669_p8 = scmp.lt.s32.totalorder %s1667_s24, %s1663_s17 }
 0x229   : > { %p1665_p7 = pnand %p1664_p3, %p1949_p0 }
 0x22a   : > { %p1670_p11 = por %p1669_p8, %p1668_p5 }
 0x22b   : > { %p1666_p10 = pneg %p1665_p7 }
 0x22d   : > { %p1671_p13 = pnand %p1670_p11, %p1666_p10 }
 0x22f   : > { %1674 = shalt.err (!%p1671_p13)
}
 0x230   : > { %1509 = dma.vmem_to_hbm [thread:$0]  (%p1949_p0), %s1889_s27, 512, %s1887_s5, %s1247_s16  }
 0x231 PF: > { %s1273_s4 = sand.u32 1, %s1705_s12   ;;  %p1950_p1 = scmp.ne.s32.totalorder %s1939_s19, 0 }
 0x232   : > { %p1951_p2 = scmp.ge.s32.totalorder %s1717_s15, 2  ;;  %s1274_s18 = scalar_lea.sflag [#allocation4], %s1273_s4 }
 0x234   : > { %p1523_p4 = pnand %p1951_p2, %p1950_p1 }
 0x236   : > { %p1524_p6 = pneg %p1523_p4 }
 0x238   : > { %1700 = dma.done.wait (%p1524_p6), %s1274_s18, 512  }
 0x239   : > { %1702 = vsyncadd (%p1524_p6), %s1274_s18, 4294966784  ;;  %p17_p9 = scmp.ge.s32.totalorder %s1818_s7, 4   ;;  %s1952_s12 = smov %s1709_s13 }
 0x23a   : > { %s1953_s13 = smov %s1713_s14  ;;  %s1954_s14 = smov %s1834_s11 }
 0x23b   : > { %s1955_s15 = smov %s1818_s7  ;;  %19 = sbr.rel (!%p17_p9) target bundleno = 6 (0x6), region = 85 }
 0x240   :  { %1279 = vsyncpa [#allocation3], 1 }
 0x241   :  { %1281 = vsyncpa [#allocation3 + $0x1], 1 }
 0x242   :  { %1282 = vsyncpa [#allocation6], 1 }
 0x243   :  { %1283 = vsyncpa [#allocation4], 1 }
 0x244   :  { %1285 = vsyncpa [#allocation4 + $0x1], 1 }

</bundles_post_ra>
